<compile_context>
chip_gen: v6e
topology: v6e:2x2x1
jax: 0.10.0
libtpu: 0.0.40
codegen_flags: <defaults>
</compile_context>

<pallas_src>
import functools

import jax
import jax.numpy as jnp
from jax.experimental import pallas as pl
from jax.experimental.pallas import tpu as pltpu

BN_EPS = 1e-5


# ------------------------------ helpers --------------------------------------

@functools.lru_cache(maxsize=None)
def _vmem_limit_bytes():
    """Per-generation VMEM cap: ~75% of physical, never the whole thing."""
    try:
        return int(pltpu.get_tpu_info().vmem_capacity_bytes * 0.75)
    except Exception:
        return 48 * 1024 * 1024


def _banded_weights(w_hwio, W):
    """(3,3,Cin,Cout) HWIO -> (3, (W+2)*Cin, W*Cout) bf16 band matrices.

    band[dy][(wo+dx)*Cin + ci, wo*Cout + co] == w[dy, dx, ci, co], zeros
    elsewhere, so a single lane-dense matmul of a padded row block
    (H+2, (W+2)*Cin) with band[dy] performs the dx/channel contraction for
    every output column at once.
    """
    kh, kw, cin, cout = w_hwio.shape
    pw = W + kw - 1
    p = jnp.arange(pw)[:, None]                     # padded column index
    wo = jnp.arange(W)[None, :]                     # output column index
    dx = p - wo
    valid = (dx >= 0) & (dx < kw)
    dx_c = jnp.clip(dx, 0, kw - 1)
    bands = []
    for dy in range(kh):
        t = w_hwio[dy][dx_c]                        # (pw, W, cin, cout)
        t = jnp.where(valid[:, :, None, None], t, 0.0)
        bands.append(jnp.transpose(t, (0, 2, 1, 3)).reshape(pw * cin, W * cout))
    return jnp.stack(bands, axis=0).astype(jnp.bfloat16)


def _bn_affine(partial_stats, gamma, beta, count, W, C):
    """Fold per-image partial (sum, sumsq) into a lane-tiled BN affine."""
    n = partial_stats.shape[0]
    tot = partial_stats.reshape(n, 2, W, C).sum(axis=(0, 2))      # (2, C)
    mean = tot[0] / count
    # single-pass variance; clamp guards tiny negatives from cancellation.
    var = jnp.maximum(tot[1] / count - mean * mean, 0.0)
    scale = gamma.reshape(-1) * jax.lax.rsqrt(var + BN_EPS)
    shift = beta.reshape(-1) - mean * scale
    # tile per-channel affine to the (W*C) lane layout used inside the kernels
    return (jnp.tile(scale, W).reshape(1, W * C),
            jnp.tile(shift, W).reshape(1, W * C))


# ------------------------------ kernels ---------------------------------------

def conv_bn_stats_kernel(x_ref, w_ref, scale_ref, shift_ref, c_ref, stats_ref,
                         *, channels: int, pre_act: bool):
    """One image: [optional BN-affine + swish] -> 3x3 conv -> partial BN stats.

    x_ref:     (1, H, W*C) f32   lane-dense activation block
    w_ref:     (3, (W+2)*C, W*C) bf16 banded conv weights
    scale_ref: (1, W*C) f32      BN1 affine (tiled per lane); unused if !pre_act
    shift_ref: (1, W*C) f32
    c_ref:     (1, H, W*C) f32   raw conv output (lane-dense store)
    stats_ref: (1, 2, W*C) f32   per-image [sum; sum of squares] of conv output
    """
    C = channels
    H = x_ref.shape[1]
    WC = x_ref.shape[2]
    PWC = WC + 2 * C

    x = x_ref[0]                                          # (H, W*C) f32
    if pre_act:
        y = x * scale_ref[...] + shift_ref[...]           # BN as 2-op affine
        y = y * jax.nn.sigmoid(y)                         # swish (EUP)
    else:
        y = x

    # Zero halo built as a value (no scratch, no masked border stores);
    # cast to bf16 once — it only feeds the MXU.
    zc = jnp.zeros((H, C), jnp.float32)
    zr = jnp.zeros((1, PWC), jnp.float32)
    pad = jnp.concatenate(
        [zr, jnp.concatenate([zc, y, zc], axis=1), zr],
        axis=0).astype(jnp.bfloat16)                      # (H+2, (W+2)*C)

    # 3x3 conv as 3 lane-dense MXU matmuls; the dy row-shift is applied on the
    # cheap unpacked f32 result instead of the packed bf16 operand.
    acc = jnp.zeros((H, WC), jnp.float32)
    for dy in range(3):
        t = jnp.dot(pad, w_ref[dy], preferred_element_type=jnp.float32)
        acc = acc + t[dy:dy + H, :]

    # Per-image partial BN statistics; the host reduces over N and folds W->C,
    # which keeps the grid axis fully 'parallel' (no cross-step accumulator).
    s = jnp.sum(acc, axis=0, keepdims=True)               # (1, W*C)
    ssq = jnp.sum(acc * acc, axis=0, keepdims=True)       # (1, W*C)
    stats_ref[0] = jnp.concatenate([s, ssq], axis=0)      # (2, W*C)

    c_ref[0] = acc                                        # full-width vst


def bn_affine_residual_kernel(c_ref, x_ref, scale_ref, shift_ref, o_ref):
    """out = bn2(conv2-output) + x, with bn2 as a precomputed lane-tiled affine."""
    o_ref[0] = c_ref[0] * scale_ref[...] + shift_ref[...] + x_ref[0]


# ------------------------------ pass wrappers ---------------------------------

def _conv_bn_stats(x2, bdw, scale_t, shift_t, *, C, pre_act):
    N, H, WC = x2.shape
    W = WC // C
    PWC = (W + 2) * C
    kern = functools.partial(conv_bn_stats_kernel, channels=C, pre_act=pre_act)
    return pl.pallas_call(
        kern,
        grid=(N,),
        in_specs=[
            pl.BlockSpec((1, H, WC), lambda n: (n, 0, 0)),      # activations
            pl.BlockSpec((3, PWC, WC), lambda n: (0, 0, 0)),    # banded weights
            pl.BlockSpec((1, WC), lambda n: (0, 0)),            # BN scale (tiled)
            pl.BlockSpec((1, WC), lambda n: (0, 0)),            # BN shift (tiled)
        ],
        out_specs=(
            pl.BlockSpec((1, H, WC), lambda n: (n, 0, 0)),      # raw conv out
            pl.BlockSpec((1, 2, WC), lambda n: (n, 0, 0)),      # partial stats
        ),
        out_shape=(
            jax.ShapeDtypeStruct((N, H, WC), jnp.float32),
            jax.ShapeDtypeStruct((N, 2, WC), jnp.float32),
        ),
        compiler_params=pltpu.CompilerParams(
            dimension_semantics=("parallel",),
            vmem_limit_bytes=_vmem_limit_bytes(),
        ),
    )(x2, bdw, scale_t, shift_t)


def _bn_residual(c2, x2, scale_t, shift_t):
    N, H, WC = x2.shape
    return pl.pallas_call(
        bn_affine_residual_kernel,
        grid=(N,),
        in_specs=[
            pl.BlockSpec((1, H, WC), lambda n: (n, 0, 0)),
            pl.BlockSpec((1, H, WC), lambda n: (n, 0, 0)),
            pl.BlockSpec((1, WC), lambda n: (0, 0)),
            pl.BlockSpec((1, WC), lambda n: (0, 0)),
        ],
        out_specs=pl.BlockSpec((1, H, WC), lambda n: (n, 0, 0)),
        out_shape=jax.ShapeDtypeStruct((N, H, WC), jnp.float32),
        compiler_params=pltpu.CompilerParams(
            dimension_semantics=("parallel",),
            vmem_limit_bytes=_vmem_limit_bytes(),
        ),
    )(c2, x2, scale_t, shift_t)


# ------------------------------ full forward ----------------------------------

def residual_block_forward(x_nchw, params):
    """Forward of residualBlock. x_nchw: (N, C, H, W) float32. Returns NCHW."""
    x = jnp.transpose(x_nchw, (0, 2, 3, 1)).astype(jnp.float32)    # -> NHWC
    N, H, W, C = x.shape
    x2 = x.reshape(N, H, W * C)              # lane-dense layout (free reshape)

    # Banded conv weights built once on host, bf16.
    bdw1 = _banded_weights(params["w1"], W)
    bdw2 = _banded_weights(params["w2"], W)
    # Conv biases intentionally dropped: training-mode BN mean subtraction
    # cancels them exactly (reference below keeps them to prove it).

    ident = jnp.ones((1, W * C), jnp.float32)
    zero = jnp.zeros((1, W * C), jnp.float32)
    m = N * H * W

    # pass 1: conv1 + partial stats
    c1, st1 = _conv_bn_stats(x2, bdw1, ident, zero, C=C, pre_act=False)
    sc1, sh1 = _bn_affine(st1, params["g1"], params["beta1"], m, W, C)

    # pass 2: bn1-affine + swish + conv2 + partial stats
    c2, st2 = _conv_bn_stats(c1, bdw2, sc1, sh1, C=C, pre_act=True)
    sc2, sh2 = _bn_affine(st2, params["g2"], params["beta2"], m, W, C)

    # pass 3: bn2-affine + residual
    out2 = _bn_residual(c2, x2, sc2, sh2)

    return jnp.transpose(out2.reshape(N, H, W, C), (0, 3, 1, 2))    # -> NCHW


# -------------------------- pure-JAX reference check ---------------------------

def residual_block_ref(x_nchw, params):
    x = jnp.transpose(x_nchw, (0, 2, 3, 1)).astype(jnp.float32)

    def conv(v, w, b):
        return jax.lax.conv_general_dilated(
            v, w, window_strides=(1, 1), padding="SAME",
            dimension_numbers=("NHWC", "HWIO", "NHWC")) + b.reshape(1, 1, 1, -1)

    def bn(v, g, be):
        mu = jnp.mean(v, axis=(0, 1, 2), keepdims=True)
        var = jnp.mean((v - mu) ** 2, axis=(0, 1, 2), keepdims=True)
        return (v - mu) * jax.lax.rsqrt(var + BN_EPS) * g.reshape(1, 1, 1, -1) \
            + be.reshape(1, 1, 1, -1)

    y = bn(conv(x, params["w1"], params["b1"]), params["g1"], params["beta1"])
    y = y * jax.nn.sigmoid(y)
    z = bn(conv(y, params["w2"], params["b2"]), params["g2"], params["beta2"])
    return jnp.transpose(z + x, (0, 3, 1, 2))


# ----------------------------------- main --------------------------------------

if __name__ == "__main__":
    # in_channels must equal n for the residual add (module default is 64);
    # C=8, W=16 keeps the example tiny while making W*C exactly 128 lanes.
    N, C, H, W = 2, 8, 16, 16

    key = jax.random.PRNGKey(0)
    ks = jax.random.split(key, 9)
    fan_in = C * 3 * 3
    bound = 1.0 / (fan_in ** 0.5)   # PyTorch-style uniform init scale

    params = {
        "w1": jax.random.uniform(ks[0], (3, 3, C, C), jnp.float32, -bound, bound),
        "b1": jax.random.uniform(ks[1], (1, C), jnp.float32, -bound, bound),
        "g1": 1.0 + 0.1 * jax.random.normal(ks[2], (1, C), jnp.float32),
        "beta1": 0.1 * jax.random.normal(ks[3], (1, C), jnp.float32),
        "w2": jax.random.uniform(ks[4], (3, 3, C, C), jnp.float32, -bound, bound),
        "b2": jax.random.uniform(ks[5], (1, C), jnp.float32, -bound, bound),
        "g2": 1.0 + 0.1 * jax.random.normal(ks[6], (1, C), jnp.float32),
        "beta2": 0.1 * jax.random.normal(ks[7], (1, C), jnp.float32),
    }
    x = jax.random.normal(ks[8], (N, C, H, W), jnp.float32)

    fwd = jax.jit(residual_block_forward)
    out = jax.block_until_ready(fwd(x, params))
    ref = residual_block_ref(x, params)

    assert out.shape == (N, C, H, W)
    err = float(jnp.max(jnp.abs(out - ref)))
    # conv operands are fed to the MXU in bf16 (f32 accumulation); BN rescaling
    # amplifies the rounding, hence the loosened tolerance.
    assert err < 5e-2, err
    print("KERNEL_OK")
</pallas_src>

<mosaic_0001>
module attributes {stable_mosaic.version = 11 : i64} {
  func.func @conv_bn_stats_kernel(%arg0: i32, %arg1: memref<1x16x128xf32, #tpu.memory_space<vmem>>, %arg2: memref<3x144x128xbf16, #tpu.memory_space<vmem>>, %arg3: memref<1x128xf32, #tpu.memory_space<vmem>>, %arg4: memref<1x128xf32, #tpu.memory_space<vmem>>, %arg5: memref<1x16x128xf32, #tpu.memory_space<vmem>>, %arg6: memref<1x2x128xf32, #tpu.memory_space<vmem>>) attributes {dimension_semantics = [#tpu.dimension_semantics<parallel>], iteration_bounds = array<i64: 2>, scalar_prefetch = 0 : i64, scratch_operands = 0 : i64, tpu.core_type = #tpu.core_type<tc>, window_params = [{transform_indices = @transform_0, window_bounds = array<i64: 1, 16, 128>}, {pipeline_mode = #tpu.pipeline_mode<synchronous>, transform_indices = @transform_1, window_bounds = array<i64: 3, 144, 128>}, {pipeline_mode = #tpu.pipeline_mode<synchronous>, transform_indices = @transform_2, window_bounds = array<i64: 1, 128>}, {pipeline_mode = #tpu.pipeline_mode<synchronous>, transform_indices = @transform_3, window_bounds = array<i64: 1, 128>}, {transform_indices = @transform_4, window_bounds = array<i64: 1, 16, 128>}, {transform_indices = @transform_5, window_bounds = array<i64: 1, 2, 128>}]} {
    %c0 = arith.constant 0 : index
    %c0_0 = arith.constant 0 : index
    %c0_1 = arith.constant 0 : index
    %0 = vector.load %arg1[%c0, %c0_0, %c0_1] : memref<1x16x128xf32, #tpu.memory_space<vmem>>, vector<1x16x128xf32>
    %1 = vector.shape_cast %0 : vector<1x16x128xf32> to vector<16x128xf32>
    %cst = arith.constant 0.000000e+00 : f32
    %2 = vector.broadcast %cst : f32 to vector<16x8xf32>
    %cst_2 = arith.constant 0.000000e+00 : f32
    %3 = vector.broadcast %cst_2 : f32 to vector<1x144xf32>
    %4 = tpu.concatenate %2, %1, %2 in 1 : vector<16x8xf32>, vector<16x128xf32>, vector<16x8xf32> -> vector<16x144xf32>
    %5 = tpu.concatenate %3, %4, %3 in 0 : vector<1x144xf32>, vector<16x144xf32>, vector<1x144xf32> -> vector<18x144xf32>
    %6 = arith.truncf %5 : vector<18x144xf32> to vector<18x144xbf16>
    %cst_3 = arith.constant 0.000000e+00 : f32
    %7 = vector.broadcast %cst_3 : f32 to vector<16x128xf32>
    %c0_4 = arith.constant 0 : index
    %c0_5 = arith.constant 0 : index
    %c0_6 = arith.constant 0 : index
    %8 = vector.load %arg2[%c0_4, %c0_5, %c0_6] : memref<3x144x128xbf16, #tpu.memory_space<vmem>>, vector<1x144x128xbf16>
    %9 = vector.shape_cast %8 : vector<1x144x128xbf16> to vector<144x128xbf16>
    %cst_7 = arith.constant dense<0.000000e+00> : vector<18x128xf32>
    %10 = tpu.matmul %6, %9, %cst_7 {dimension_numbers = #tpu.dot_dimension_numbers<[1], [0], [0], [1], [0, 0, 1, 1], [], []>} : vector<18x144xbf16>, vector<144x128xbf16>, vector<18x128xf32> -> vector<18x128xf32>
    %11 = vector.extract_strided_slice %10 {offsets = [0, 0], sizes = [16, 128], strides = [1, 1]} : vector<18x128xf32> to vector<16x128xf32>
    %12 = arith.addf %7, %11 : vector<16x128xf32>
    %c1 = arith.constant 1 : index
    %c0_8 = arith.constant 0 : index
    %c0_9 = arith.constant 0 : index
    %13 = vector.load %arg2[%c1, %c0_8, %c0_9] : memref<3x144x128xbf16, #tpu.memory_space<vmem>>, vector<1x144x128xbf16>
    %14 = vector.shape_cast %13 : vector<1x144x128xbf16> to vector<144x128xbf16>
    %cst_10 = arith.constant dense<0.000000e+00> : vector<18x128xf32>
    %15 = tpu.matmul %6, %14, %cst_10 {dimension_numbers = #tpu.dot_dimension_numbers<[1], [0], [0], [1], [0, 0, 1, 1], [], []>} : vector<18x144xbf16>, vector<144x128xbf16>, vector<18x128xf32> -> vector<18x128xf32>
    %16 = vector.extract_strided_slice %15 {offsets = [1, 0], sizes = [16, 128], strides = [1, 1]} : vector<18x128xf32> to vector<16x128xf32>
    %17 = arith.addf %12, %16 : vector<16x128xf32>
    %c2 = arith.constant 2 : index
    %c0_11 = arith.constant 0 : index
    %c0_12 = arith.constant 0 : index
    %18 = vector.load %arg2[%c2, %c0_11, %c0_12] : memref<3x144x128xbf16, #tpu.memory_space<vmem>>, vector<1x144x128xbf16>
    %19 = vector.shape_cast %18 : vector<1x144x128xbf16> to vector<144x128xbf16>
    %cst_13 = arith.constant dense<0.000000e+00> : vector<18x128xf32>
    %20 = tpu.matmul %6, %19, %cst_13 {dimension_numbers = #tpu.dot_dimension_numbers<[1], [0], [0], [1], [0, 0, 1, 1], [], []>} : vector<18x144xbf16>, vector<144x128xbf16>, vector<18x128xf32> -> vector<18x128xf32>
    %21 = vector.extract_strided_slice %20 {offsets = [2, 0], sizes = [16, 128], strides = [1, 1]} : vector<18x128xf32> to vector<16x128xf32>
    %22 = arith.addf %17, %21 : vector<16x128xf32>
    %cst_14 = arith.constant dense<0.000000e+00> : vector<128xf32>
    %23 = vector.multi_reduction <add>, %22, %cst_14 [0] : vector<16x128xf32> to vector<128xf32>
    %24 = vector.shape_cast %23 : vector<128xf32> to vector<1x128xf32>
    %25 = arith.mulf %22, %22 : vector<16x128xf32>
    %cst_15 = arith.constant dense<0.000000e+00> : vector<128xf32>
    %26 = vector.multi_reduction <add>, %25, %cst_15 [0] : vector<16x128xf32> to vector<128xf32>
    %27 = vector.shape_cast %26 : vector<128xf32> to vector<1x128xf32>
    %28 = tpu.concatenate %24, %27 in 0 : vector<1x128xf32>, vector<1x128xf32> -> vector<2x128xf32>
    %c0_16 = arith.constant 0 : index
    %c0_17 = arith.constant 0 : index
    %c0_18 = arith.constant 0 : index
    %29 = vector.load %arg6[%c0_16, %c0_17, %c0_18] : memref<1x2x128xf32, #tpu.memory_space<vmem>>, vector<1x2x128xf32>
    %30 = vector.shape_cast %29 : vector<1x2x128xf32> to vector<2x128xf32>
    %31 = vector.shape_cast %28 : vector<2x128xf32> to vector<1x2x128xf32>
    tpu.vector_store %arg6[%c0_16, %c0_17, %c0_18], %31 {strides = array<i32>} : memref<1x2x128xf32, #tpu.memory_space<vmem>>, vector<1x2x128xf32>,
    %c0_19 = arith.constant 0 : index
    %c0_20 = arith.constant 0 : index
    %c0_21 = arith.constant 0 : index
    %32 = vector.load %arg5[%c0_19, %c0_20, %c0_21] : memref<1x16x128xf32, #tpu.memory_space<vmem>>, vector<1x16x128xf32>
    %33 = vector.shape_cast %32 : vector<1x16x128xf32> to vector<16x128xf32>
    %34 = vector.shape_cast %22 : vector<16x128xf32> to vector<1x16x128xf32>
    tpu.vector_store %arg5[%c0_19, %c0_20, %c0_21], %34 {strides = array<i32>} : memref<1x16x128xf32, #tpu.memory_space<vmem>>, vector<1x16x128xf32>,
    return
  }
  func.func @transform_0(%arg0: i32) -> (i32, i32, i32) {
    %c0_i32 = arith.constant 0 : i32
    %c0_i32_0 = arith.constant 0 : i32
    %c0_i32_1 = arith.constant 0 : i32
    return %arg0, %c0_i32, %c0_i32_0 : i32, i32, i32
  }
  func.func @transform_1(%arg0: i32) -> (i32, i32, i32) {
    %c0_i32 = arith.constant 0 : i32
    %c0_i32_0 = arith.constant 0 : i32
    %c0_i32_1 = arith.constant 0 : i32
    %c0_i32_2 = arith.constant 0 : i32
    return %c0_i32, %c0_i32_0, %c0_i32_1 : i32, i32, i32
  }
  func.func @transform_2(%arg0: i32) -> (i32, i32) {
    %c0_i32 = arith.constant 0 : i32
    %c0_i32_0 = arith.constant 0 : i32
    %c0_i32_1 = arith.constant 0 : i32
    return %c0_i32, %c0_i32_0 : i32, i32
  }
  func.func @transform_3(%arg0: i32) -> (i32, i32) {
    %c0_i32 = arith.constant 0 : i32
    %c0_i32_0 = arith.constant 0 : i32
    %c0_i32_1 = arith.constant 0 : i32
    return %c0_i32, %c0_i32_0 : i32, i32
  }
  func.func @transform_4(%arg0: i32) -> (i32, i32, i32) {
    %c0_i32 = arith.constant 0 : i32
    %c0_i32_0 = arith.constant 0 : i32
    %c0_i32_1 = arith.constant 0 : i32
    return %arg0, %c0_i32, %c0_i32_0 : i32, i32, i32
  }
  func.func @transform_5(%arg0: i32) -> (i32, i32, i32) {
    %c0_i32 = arith.constant 0 : i32
    %c0_i32_0 = arith.constant 0 : i32
    %c0_i32_1 = arith.constant 0 : i32
    return %arg0, %c0_i32, %c0_i32_0 : i32, i32, i32
  }
}

module attributes {stable_mosaic.version = 11 : i64} {
  func.func @conv_bn_stats_kernel(%arg0: i32, %arg1: memref<1x16x128xf32, #tpu.memory_space<vmem>>, %arg2: memref<3x144x128xbf16, #tpu.memory_space<vmem>>, %arg3: memref<1x128xf32, #tpu.memory_space<vmem>>, %arg4: memref<1x128xf32, #tpu.memory_space<vmem>>, %arg5: memref<1x16x128xf32, #tpu.memory_space<vmem>>, %arg6: memref<1x2x128xf32, #tpu.memory_space<vmem>>) attributes {dimension_semantics = [#tpu.dimension_semantics<parallel>], iteration_bounds = array<i64: 2>, scalar_prefetch = 0 : i64, scratch_operands = 0 : i64, tpu.core_type = #tpu.core_type<tc>, window_params = [{transform_indices = @transform_0, window_bounds = array<i64: 1, 16, 128>}, {pipeline_mode = #tpu.pipeline_mode<synchronous>, transform_indices = @transform_1, window_bounds = array<i64: 3, 144, 128>}, {pipeline_mode = #tpu.pipeline_mode<synchronous>, transform_indices = @transform_2, window_bounds = array<i64: 1, 128>}, {pipeline_mode = #tpu.pipeline_mode<synchronous>, transform_indices = @transform_3, window_bounds = array<i64: 1, 128>}, {transform_indices = @transform_4, window_bounds = array<i64: 1, 16, 128>}, {transform_indices = @transform_5, window_bounds = array<i64: 1, 2, 128>}]} {
    %c0 = arith.constant 0 : index
    %c0_0 = arith.constant 0 : index
    %c0_1 = arith.constant 0 : index
    %0 = vector.load %arg1[%c0, %c0_0, %c0_1] : memref<1x16x128xf32, #tpu.memory_space<vmem>>, vector<1x16x128xf32>
    %1 = vector.shape_cast %0 : vector<1x16x128xf32> to vector<16x128xf32>
    %c0_2 = arith.constant 0 : index
    %c0_3 = arith.constant 0 : index
    %2 = vector.load %arg3[%c0_2, %c0_3] : memref<1x128xf32, #tpu.memory_space<vmem>>, vector<1x128xf32>
    %3 = vector.broadcast %2 : vector<1x128xf32> to vector<16x128xf32>
    %4 = arith.mulf %1, %3 : vector<16x128xf32>
    %c0_4 = arith.constant 0 : index
    %c0_5 = arith.constant 0 : index
    %5 = vector.load %arg4[%c0_4, %c0_5] : memref<1x128xf32, #tpu.memory_space<vmem>>, vector<1x128xf32>
    %6 = vector.broadcast %5 : vector<1x128xf32> to vector<16x128xf32>
    %7 = arith.addf %4, %6 : vector<16x128xf32>
    %8 = arith.negf %7 : vector<16x128xf32>
    %9 = math.exp %8 : vector<16x128xf32>
    %cst = arith.constant 1.000000e+00 : f32
    %10 = vector.broadcast %cst : f32 to vector<16x128xf32>
    %11 = arith.addf %10, %9 : vector<16x128xf32>
    %12 = arith.divf %10, %11 : vector<16x128xf32>
    %13 = arith.mulf %7, %12 : vector<16x128xf32>
    %cst_6 = arith.constant 0.000000e+00 : f32
    %14 = vector.broadcast %cst_6 : f32 to vector<16x8xf32>
    %cst_7 = arith.constant 0.000000e+00 : f32
    %15 = vector.broadcast %cst_7 : f32 to vector<1x144xf32>
    %16 = tpu.concatenate %14, %13, %14 in 1 : vector<16x8xf32>, vector<16x128xf32>, vector<16x8xf32> -> vector<16x144xf32>
    %17 = tpu.concatenate %15, %16, %15 in 0 : vector<1x144xf32>, vector<16x144xf32>, vector<1x144xf32> -> vector<18x144xf32>
    %18 = arith.truncf %17 : vector<18x144xf32> to vector<18x144xbf16>
    %cst_8 = arith.constant 0.000000e+00 : f32
    %19 = vector.broadcast %cst_8 : f32 to vector<16x128xf32>
    %c0_9 = arith.constant 0 : index
    %c0_10 = arith.constant 0 : index
    %c0_11 = arith.constant 0 : index
    %20 = vector.load %arg2[%c0_9, %c0_10, %c0_11] : memref<3x144x128xbf16, #tpu.memory_space<vmem>>, vector<1x144x128xbf16>
    %21 = vector.shape_cast %20 : vector<1x144x128xbf16> to vector<144x128xbf16>
    %cst_12 = arith.constant dense<0.000000e+00> : vector<18x128xf32>
    %22 = tpu.matmul %18, %21, %cst_12 {dimension_numbers = #tpu.dot_dimension_numbers<[1], [0], [0], [1], [0, 0, 1, 1], [], []>} : vector<18x144xbf16>, vector<144x128xbf16>, vector<18x128xf32> -> vector<18x128xf32>
    %23 = vector.extract_strided_slice %22 {offsets = [0, 0], sizes = [16, 128], strides = [1, 1]} : vector<18x128xf32> to vector<16x128xf32>
    %24 = arith.addf %19, %23 : vector<16x128xf32>
    %c1 = arith.constant 1 : index
    %c0_13 = arith.constant 0 : index
    %c0_14 = arith.constant 0 : index
    %25 = vector.load %arg2[%c1, %c0_13, %c0_14] : memref<3x144x128xbf16, #tpu.memory_space<vmem>>, vector<1x144x128xbf16>
    %26 = vector.shape_cast %25 : vector<1x144x128xbf16> to vector<144x128xbf16>
    %cst_15 = arith.constant dense<0.000000e+00> : vector<18x128xf32>
    %27 = tpu.matmul %18, %26, %cst_15 {dimension_numbers = #tpu.dot_dimension_numbers<[1], [0], [0], [1], [0, 0, 1, 1], [], []>} : vector<18x144xbf16>, vector<144x128xbf16>, vector<18x128xf32> -> vector<18x128xf32>
    %28 = vector.extract_strided_slice %27 {offsets = [1, 0], sizes = [16, 128], strides = [1, 1]} : vector<18x128xf32> to vector<16x128xf32>
    %29 = arith.addf %24, %28 : vector<16x128xf32>
    %c2 = arith.constant 2 : index
    %c0_16 = arith.constant 0 : index
    %c0_17 = arith.constant 0 : index
    %30 = vector.load %arg2[%c2, %c0_16, %c0_17] : memref<3x144x128xbf16, #tpu.memory_space<vmem>>, vector<1x144x128xbf16>
    %31 = vector.shape_cast %30 : vector<1x144x128xbf16> to vector<144x128xbf16>
    %cst_18 = arith.constant dense<0.000000e+00> : vector<18x128xf32>
    %32 = tpu.matmul %18, %31, %cst_18 {dimension_numbers = #tpu.dot_dimension_numbers<[1], [0], [0], [1], [0, 0, 1, 1], [], []>} : vector<18x144xbf16>, vector<144x128xbf16>, vector<18x128xf32> -> vector<18x128xf32>
    %33 = vector.extract_strided_slice %32 {offsets = [2, 0], sizes = [16, 128], strides = [1, 1]} : vector<18x128xf32> to vector<16x128xf32>
    %34 = arith.addf %29, %33 : vector<16x128xf32>
    %cst_19 = arith.constant dense<0.000000e+00> : vector<128xf32>
    %35 = vector.multi_reduction <add>, %34, %cst_19 [0] : vector<16x128xf32> to vector<128xf32>
    %36 = vector.shape_cast %35 : vector<128xf32> to vector<1x128xf32>
    %37 = arith.mulf %34, %34 : vector<16x128xf32>
    %cst_20 = arith.constant dense<0.000000e+00> : vector<128xf32>
    %38 = vector.multi_reduction <add>, %37, %cst_20 [0] : vector<16x128xf32> to vector<128xf32>
    %39 = vector.shape_cast %38 : vector<128xf32> to vector<1x128xf32>
    %40 = tpu.concatenate %36, %39 in 0 : vector<1x128xf32>, vector<1x128xf32> -> vector<2x128xf32>
    %c0_21 = arith.constant 0 : index
    %c0_22 = arith.constant 0 : index
    %c0_23 = arith.constant 0 : index
    %41 = vector.load %arg6[%c0_21, %c0_22, %c0_23] : memref<1x2x128xf32, #tpu.memory_space<vmem>>, vector<1x2x128xf32>
    %42 = vector.shape_cast %41 : vector<1x2x128xf32> to vector<2x128xf32>
    %43 = vector.shape_cast %40 : vector<2x128xf32> to vector<1x2x128xf32>
    tpu.vector_store %arg6[%c0_21, %c0_22, %c0_23], %43 {strides = array<i32>} : memref<1x2x128xf32, #tpu.memory_space<vmem>>, vector<1x2x128xf32>,
    %c0_24 = arith.constant 0 : index
    %c0_25 = arith.constant 0 : index
    %c0_26 = arith.constant 0 : index
    %44 = vector.load %arg5[%c0_24, %c0_25, %c0_26] : memref<1x16x128xf32, #tpu.memory_space<vmem>>, vector<1x16x128xf32>
    %45 = vector.shape_cast %44 : vector<1x16x128xf32> to vector<16x128xf32>
    %46 = vector.shape_cast %34 : vector<16x128xf32> to vector<1x16x128xf32>
    tpu.vector_store %arg5[%c0_24, %c0_25, %c0_26], %46 {strides = array<i32>} : memref<1x16x128xf32, #tpu.memory_space<vmem>>, vector<1x16x128xf32>,
    return
  }
  func.func @transform_0(%arg0: i32) -> (i32, i32, i32) {
    %c0_i32 = arith.constant 0 : i32
    %c0_i32_0 = arith.constant 0 : i32
    %c0_i32_1 = arith.constant 0 : i32
    return %arg0, %c0_i32, %c0_i32_0 : i32, i32, i32
  }
  func.func @transform_1(%arg0: i32) -> (i32, i32, i32) {
    %c0_i32 = arith.constant 0 : i32
    %c0_i32_0 = arith.constant 0 : i32
    %c0_i32_1 = arith.constant 0 : i32
    %c0_i32_2 = arith.constant 0 : i32
    return %c0_i32, %c0_i32_0, %c0_i32_1 : i32, i32, i32
  }
  func.func @transform_2(%arg0: i32) -> (i32, i32) {
    %c0_i32 = arith.constant 0 : i32
    %c0_i32_0 = arith.constant 0 : i32
    %c0_i32_1 = arith.constant 0 : i32
    return %c0_i32, %c0_i32_0 : i32, i32
  }
  func.func @transform_3(%arg0: i32) -> (i32, i32) {
    %c0_i32 = arith.constant 0 : i32
    %c0_i32_0 = arith.constant 0 : i32
    %c0_i32_1 = arith.constant 0 : i32
    return %c0_i32, %c0_i32_0 : i32, i32
  }
  func.func @transform_4(%arg0: i32) -> (i32, i32, i32) {
    %c0_i32 = arith.constant 0 : i32
    %c0_i32_0 = arith.constant 0 : i32
    %c0_i32_1 = arith.constant 0 : i32
    return %arg0, %c0_i32, %c0_i32_0 : i32, i32, i32
  }
  func.func @transform_5(%arg0: i32) -> (i32, i32, i32) {
    %c0_i32 = arith.constant 0 : i32
    %c0_i32_0 = arith.constant 0 : i32
    %c0_i32_1 = arith.constant 0 : i32
    return %arg0, %c0_i32, %c0_i32_0 : i32, i32, i32
  }
}

module attributes {stable_mosaic.version = 11 : i64} {
  func.func @bn_affine_residual_kernel(%arg0: i32, %arg1: memref<1x16x128xf32, #tpu.memory_space<vmem>>, %arg2: memref<1x16x128xf32, #tpu.memory_space<vmem>>, %arg3: memref<1x128xf32, #tpu.memory_space<vmem>>, %arg4: memref<1x128xf32, #tpu.memory_space<vmem>>, %arg5: memref<1x16x128xf32, #tpu.memory_space<vmem>>) attributes {dimension_semantics = [#tpu.dimension_semantics<parallel>], iteration_bounds = array<i64: 2>, scalar_prefetch = 0 : i64, scratch_operands = 0 : i64, tpu.core_type = #tpu.core_type<tc>, window_params = [{transform_indices = @transform_0, window_bounds = array<i64: 1, 16, 128>}, {transform_indices = @transform_1, window_bounds = array<i64: 1, 16, 128>}, {pipeline_mode = #tpu.pipeline_mode<synchronous>, transform_indices = @transform_2, window_bounds = array<i64: 1, 128>}, {pipeline_mode = #tpu.pipeline_mode<synchronous>, transform_indices = @transform_3, window_bounds = array<i64: 1, 128>}, {transform_indices = @transform_4, window_bounds = array<i64: 1, 16, 128>}]} {
    %c0 = arith.constant 0 : index
    %c0_0 = arith.constant 0 : index
    %c0_1 = arith.constant 0 : index
    %0 = vector.load %arg1[%c0, %c0_0, %c0_1] : memref<1x16x128xf32, #tpu.memory_space<vmem>>, vector<1x16x128xf32>
    %1 = vector.shape_cast %0 : vector<1x16x128xf32> to vector<16x128xf32>
    %c0_2 = arith.constant 0 : index
    %c0_3 = arith.constant 0 : index
    %2 = vector.load %arg3[%c0_2, %c0_3] : memref<1x128xf32, #tpu.memory_space<vmem>>, vector<1x128xf32>
    %3 = vector.broadcast %2 : vector<1x128xf32> to vector<16x128xf32>
    %4 = arith.mulf %1, %3 : vector<16x128xf32>
    %c0_4 = arith.constant 0 : index
    %c0_5 = arith.constant 0 : index
    %5 = vector.load %arg4[%c0_4, %c0_5] : memref<1x128xf32, #tpu.memory_space<vmem>>, vector<1x128xf32>
    %6 = vector.broadcast %5 : vector<1x128xf32> to vector<16x128xf32>
    %7 = arith.addf %4, %6 : vector<16x128xf32>
    %c0_6 = arith.constant 0 : index
    %c0_7 = arith.constant 0 : index
    %c0_8 = arith.constant 0 : index
    %8 = vector.load %arg2[%c0_6, %c0_7, %c0_8] : memref<1x16x128xf32, #tpu.memory_space<vmem>>, vector<1x16x128xf32>
    %9 = vector.shape_cast %8 : vector<1x16x128xf32> to vector<16x128xf32>
    %10 = arith.addf %7, %9 : vector<16x128xf32>
    %c0_9 = arith.constant 0 : index
    %c0_10 = arith.constant 0 : index
    %c0_11 = arith.constant 0 : index
    %11 = vector.load %arg5[%c0_9, %c0_10, %c0_11] : memref<1x16x128xf32, #tpu.memory_space<vmem>>, vector<1x16x128xf32>
    %12 = vector.shape_cast %11 : vector<1x16x128xf32> to vector<16x128xf32>
    %13 = vector.shape_cast %10 : vector<16x128xf32> to vector<1x16x128xf32>
    tpu.vector_store %arg5[%c0_9, %c0_10, %c0_11], %13 {strides = array<i32>} : memref<1x16x128xf32, #tpu.memory_space<vmem>>, vector<1x16x128xf32>,
    return
  }
  func.func @transform_0(%arg0: i32) -> (i32, i32, i32) {
    %c0_i32 = arith.constant 0 : i32
    %c0_i32_0 = arith.constant 0 : i32
    %c0_i32_1 = arith.constant 0 : i32
    return %arg0, %c0_i32, %c0_i32_0 : i32, i32, i32
  }
  func.func @transform_1(%arg0: i32) -> (i32, i32, i32) {
    %c0_i32 = arith.constant 0 : i32
    %c0_i32_0 = arith.constant 0 : i32
    %c0_i32_1 = arith.constant 0 : i32
    return %arg0, %c0_i32, %c0_i32_0 : i32, i32, i32
  }
  func.func @transform_2(%arg0: i32) -> (i32, i32) {
    %c0_i32 = arith.constant 0 : i32
    %c0_i32_0 = arith.constant 0 : i32
    %c0_i32_1 = arith.constant 0 : i32
    return %c0_i32, %c0_i32_0 : i32, i32
  }
  func.func @transform_3(%arg0: i32) -> (i32, i32) {
    %c0_i32 = arith.constant 0 : i32
    %c0_i32_0 = arith.constant 0 : i32
    %c0_i32_1 = arith.constant 0 : i32
    return %c0_i32, %c0_i32_0 : i32, i32
  }
  func.func @transform_4(%arg0: i32) -> (i32, i32, i32) {
    %c0_i32 = arith.constant 0 : i32
    %c0_i32_0 = arith.constant 0 : i32
    %c0_i32_1 = arith.constant 0 : i32
    return %arg0, %c0_i32, %c0_i32_0 : i32, i32, i32
  }
}

</mosaic_0001>

<bundles_post_ra>
// kernel: residual_block_forward.3
= control target key start
LH: loop header
LB: loop body
LE: loop exit
PB: predicated region body
PF: predicated region fallthrough
CT: control target
= control target key end

     0   :  { %s985_s18 = smov 0   ;;  %s1169_s0 = inlined_call_operand.vmem [shape: f32[2,16,128], index: 0, kind: input, shape index: {}]   ;;  %s1170_s1 = inlined_call_operand.vmem [shape: bf16[3,144,128], index: 1, kind: input, shape index: {}]   ;;  %s1171_s2 = inlined_call_operand.vmem [shape: f32[1,128], index: 2, kind: input, shape index: {}]   ;;  %s1172_s3 = inlined_call_operand.vmem [shape: f32[1,128], index: 3, kind: input, shape index: {}]   ;;  %s1173_s4 = inlined_call_operand.vmem [shape: f32[2,16,128], index: 4, kind: output, shape index: {0}]   ;;  %s1174_s5 = inlined_call_operand.vmem [shape: f32[2,2,128], index: 5, kind: output, shape index: {1}]  }
   0x1 LB: > { %s779_s2 = sadd.s32 4294967295, %s950_s18   ;;  %p783_p0 = scmp.ge.s32.totalorder %s950_s18, 1  ;;  %s950_s18 = sphi %s985_s18, %s16_s18  }
   0x2   : > { %p190_p1 = scmp.lt.s32.totalorder %s950_s18, 3 }
   0x4   : > { %p191_p2 = pnand %p783_p0, %p190_p1 }
   0x5   : > { %p222_p3 = scmp.lt.s32.totalorder (!%p191_p2), %s779_s2, 1  ;;  %s953_s9 = smov (!%p191_p2), 8  }
   0x6   : > { %194 = sbr.rel (%p191_p2) target bundleno = 398 (0x18e), region = 36 }
   0xb   : > { %v917_v0 = vld [vmem:[%s1170_s1 + $0x38] sm:$0xff]   ;;  %v952_v1 = vmov 0   ;;  %s1180_s2 = smov (!%p222_p3, %s779_s2), 1  ;;  %v918_v2 = vld [vmem:[%s1170_s1 + $0x80] sm:$0xff]   ;;  %v919_v3 = vld [vmem:[%s1170_s1 + $0x30] sm:$0xff]   ;;  %vm247_vm0 = vcmask 64512  }
   0xc   : > { %356 = vmatprep.subr.bf16.mxu0 %v952_v1  ;;  %478 = vmatprep.subr.bf16.mxu1 %v952_v1  ;;  %s881_s24 = sshll.u32 %s1180_s2, 4  ;;  %v920_v4 = vld [vmem:[%s1170_s1 + $0x78] sm:$0xff]   ;;  %v921_v7 = vld [vmem:[%s1170_s1 + $0x28] sm:$0xff]   ;;  %v922_v9 = vld [vmem:[%s1170_s1 + $0x70] sm:$0xff]   ;;  %vm256_vm1 = vcmask 1040384   ;;  %vm349_vm3 = vcmask 130048  }
   0xd   : > { %357 = vmatpush1.bf16.msra.mxu0 %v917_v0  ;;  %479 = vmatpush1.bf16.msra.mxu1 %v918_v2  ;;  %s226_s29 = scalar_lea.vmem %s1169_s0, %s881_s24  ;;  %v923_v10 = vld [vmem:[%s1170_s1 + $0x20] sm:$0xff]   ;;  %v924_v11 = vld [vmem:[%s1170_s1 + $0x68] sm:$0xff]   ;;  %v925_v12 = vld [vmem:[%s1170_s1 + $0x18] sm:$0xff]   ;;  %vm954_vm4 = vmmov 1   ;;  %vm529_vm7 = vcmask 1046528   ;;  %vm663_vm8 = vcmask 1045504   ;;  %s231_s6 = scalar_lea.vmem %s1173_s4, %s881_s24 }
   0xe   : > { %358 = vmatprep.subr.bf16.mxu0 %v952_v1  ;;  %480 = vmatprep.subr.bf16.mxu1 %v952_v1  ;;  %v237_v5 = vld [vmem:[%s226_s29] sm:$0xff]  ;;  %v238_v6 = vld [vmem:[%s226_s29 + $0x8] sm:$0xff]  ;;  %v927_v14 = vld [vmem:[%s1170_s1 + $0x10] sm:$0xff]   ;;  %s788_s24 = sshll.u32 %s1180_s2, 1 }
   0xf   : > { %v912_v8 = vpack.i.bf16 %v238_v6, %v237_v5  ;;  %v926_v13 = vld [vmem:[%s1170_s1 + $0x60] sm:$0xff]   ;;  %v928_v15 = vld [vmem:[%s1170_s1 + $0x58] sm:$0xff]   ;;  %v929_v16 = vld [vmem:[%s1170_s1 + $0x8] sm:$0xff]  }
  0x10   : > { %v930_v17 = vld [vmem:[%s1170_s1 + $0x50] sm:$0xff]   ;;  %v931_v18 = vld [vmem:[%s1170_s1] sm:$0xff]   ;;  %v932_v19 = vld [vmem:[%s1170_s1 + $0x48] sm:$0xff]  }
  0x11   : > { %359 = vmatpush1.bf16.msra.mxu0 %v919_v3  ;;  %481 = vmatpush1.bf16.msra.mxu1 %v920_v4  ;;  %v933_v20 = vld [vmem:[%s1170_s1 + $0x40] sm:$0xff]   ;;  %v934_v21 = vld [vmem:[%s1170_s1 + $0x88] sm:$0xff]   ;;  %vm799_vm2 = vmneg %vm256_vm1 }
  0x12   : > { %360 = vmatprep.subr.bf16.mxu0 %v952_v1  ;;  %913 = vrot.lane.b32.xlu0 %v912_v8, %s953_s9  ;;  %vm1082_vm5 = vmpackc.low %vm954_vm4, %vm799_vm2  ;;  %v935_v40 = vld [vmem:[%s1170_s1 + $0xc8] sm:$0xff]   ;;  %v936_v42 = vld [vmem:[%s1170_s1 + $0xc0] sm:$0xff]   ;;  %s235_s9 = scalar_lea.vmem %s1174_s5, %s788_s24 }
  0x13   : > { %482 = vmatprep.subr.bf16.mxu1 %v952_v1  ;;  %vm1106_vm6 = vmpackc.low %vm256_vm1, %vm256_vm1  ;;  %v937_v44 = vld [vmem:[%s1170_s1 + $0xb8] sm:$0xff]   ;;  %v938_v46 = vld [vmem:[%s1170_s1 + $0xb0] sm:$0xff]  }
  0x14   : > { %v939_v47 = vld [vmem:[%s1170_s1 + $0xa8] sm:$0xff]   ;;  %v940_v48 = vld [vmem:[%s1170_s1 + $0xa0] sm:$0xff]   ;;  %v941_v49 = vld [vmem:[%s1170_s1 + $0x98] sm:$0xff]  }
  0x15   : > { %361 = vmatpush1.bf16.msra.mxu0 %v921_v7  ;;  %483 = vmatpush1.bf16.msra.mxu1 %v922_v9  ;;  %v942_v50 = vld [vmem:[%s1170_s1 + $0x90] sm:$0xff]  }
  0x16   : > { %362 = vmatprep.subr.bf16.mxu0 %v952_v1  ;;  %484 = vmatprep.subr.bf16.mxu1 %v952_v1  ;;  %v943_v51 = vld [vmem:[%s1170_s1 + $0xd0] sm:$0xff]  }
  0x19   : > { %363 = vmatpush1.bf16.msra.mxu0 %v923_v10  ;;  %485 = vmatpush1.bf16.msra.mxu1 %v924_v11 }
  0x1a   : > { %364 = vmatprep.subr.bf16.mxu0 %v952_v1  ;;  %486 = vmatprep.subr.bf16.mxu1 %v952_v1 }
  0x1d   : > { %365 = vmatpush1.bf16.msra.mxu0 %v925_v12  ;;  %487 = vmatpush1.bf16.msra.mxu1 %v926_v13 }
  0x1e   : > { %366 = vmatprep.subr.bf16.mxu0 %v952_v1  ;;  %488 = vmatprep.subr.bf16.mxu1 %v952_v1 }
  0x21   : > { %367 = vmatpush1.bf16.msra.mxu0 %v927_v14  ;;  %489 = vmatpush1.bf16.msra.mxu1 %v928_v15 }
  0x22   : > { %368 = vmatprep.subr.bf16.mxu0 %v952_v1  ;;  %490 = vmatprep.subr.bf16.mxu1 %v952_v1 }
  0x25   : > { %369 = vmatpush1.bf16.msra.mxu0 %v929_v16  ;;  %491 = vmatpush1.bf16.msra.mxu1 %v930_v17 }
  0x26   : > { %370 = vmatprep.subr.bf16.mxu0 %v952_v1  ;;  %492 = vmatprep.subr.bf16.mxu1 %v952_v1 }
  0x29   : > { %371 = vmatpush1.bf16.msra.mxu0 %v931_v18  ;;  %493 = vmatpush1.bf16.msra.mxu1 %v932_v19 }
  0x2a   : > { %386 = vmatprep.subr.bf16.mxu0 %v952_v1  ;;  %508 = vmatprep.subr.bf16.mxu1 %v952_v1 }
  0x2d   : > { %387 = vmatpush2.bf16.msra.mxu0 %v933_v20  ;;  %509 = vmatpush2.bf16.msra.mxu1 %v934_v21 }
  0x2e   : > { %612 = vmatprep.subr.bf16.mxu0 %v952_v1  ;;  %883 = vmatprep.subr.bf16.mxu1 %v952_v1 }
  0x84   : > { %v914_v22 = vpop.permute.xlu0 %913 }
  0x85   : > { %v916_v23 = vunpack.i.h.bf16 %v914_v22  ;;  %v915_v24 = vunpack.i.l.bf16 %v914_v22 }
  0x87   : > { %v249_v25 = vsel %vm247_vm0, 0.0, %v916_v23  ;;  %v251_v26 = vsel %vm247_vm0, %v916_v23, 0.0  ;;  %v248_v27 = vsel %vm247_vm0, 0.0, %v915_v24  ;;  %v250_v28 = vsel %vm247_vm0, %v915_v24, 0.0 }
  0x88   : > { %v259_v29 = vrot.slane %v249_v25, 7  ;;  %v261_v30 = vrot.slane %v251_v26, 7  ;;  %v257_v31 = vrot.slane %v248_v27, 7  ;;  %v258_v32 = vrot.slane %v250_v28, 7 }
  0x8a   : > { %v260_v33 = vsel %vm256_vm1, %v257_v31, %v259_v29  ;;  %v270_v34 = vsel %vm256_vm1, 0.0, %v258_v32  ;;  %v262_v36 = vsel %vm256_vm1, %v258_v32, %v261_v30  ;;  %v272_v37 = vsel %vm256_vm1, %v261_v30, 0.0 }
  0x8b   : > { %v1078_v35 = vpack.c.bf16 %v260_v33, %v257_v31  ;;  %v274_v38 = vpack.c.bf16 %v262_v36, %v270_v34  ;;  %v276_v41 = vpack.c.bf16 %v272_v37, %v272_v37  ;;  %v805_v45 = vpack.c.bf16 %v259_v29, %v259_v29 }
  0x8d   : > { %798 = vmatprep.mubr.msk.bf16.mxu0 %vm349_vm3, %v274_v38  ;;  %834 = vmatprep.mubr.msk.bf16.mxu1 %vm349_vm3, %v274_v38 }
  0x8e   : > { %802 = vmatmul.mubr.msk.bf16.vlgmr.msra.gmra.mxu0 %vm1082_vm5, %v1078_v35  ;;  %838 = vmatmul.mubr.msk.bf16.vlgmr.msra.gmra.mxu1 %vm1082_vm5, %v1078_v35 }
  0x8f   : > { %613 = vmatpush1.bf16.msra.mxu0 %v935_v40  ;;  %892 = vmatpush1.bf16.msra.mxu1 %v935_v40 }
  0x90   : > { %803 = vmatprep.mubr.msk.bf16.mxu0 %vm349_vm3, %v276_v41  ;;  %839 = vmatprep.mubr.msk.bf16.mxu1 %vm349_vm3, %v276_v41 }
  0x91   : > { %614 = vmatprep.subr.bf16.mxu0 %v952_v1  ;;  %884 = vmatprep.subr.bf16.mxu1 %v952_v1 }
  0x93   : > { %615 = vmatpush1.bf16.msra.mxu0 %v936_v42  ;;  %893 = vmatpush1.bf16.msra.mxu1 %v936_v42 }
  0x94   : > { %616 = vmatprep.subr.bf16.mxu0 %v952_v1  ;;  %885 = vmatprep.subr.bf16.mxu1 %v952_v1 }
  0x96   : > { %806 = vmatmul.mubr.msk.bf16.gmra.mxu0 %vm1106_vm6, %v805_v45  ;;  %842 = vmatmul.mubr.msk.bf16.gmra.mxu1 %vm1106_vm6, %v805_v45 }
  0x97   : > { %617 = vmatpush1.bf16.msra.mxu0 %v937_v44  ;;  %894 = vmatpush1.bf16.msra.mxu1 %v937_v44 }
  0x98   : > { %870 = vmatprep.mubr.msk.bf16.mxu0 %vm349_vm3, %v274_v38  ;;  %875 = vmatprep.mubr.msk.bf16.mxu1 %vm349_vm3, %v276_v41 }
  0x99   : > { %618 = vmatprep.subr.bf16.mxu0 %v952_v1  ;;  %886 = vmatprep.subr.bf16.mxu1 %v952_v1 }
  0x9b   : > { %619 = vmatpush1.bf16.msra.mxu0 %v938_v46  ;;  %895 = vmatpush1.bf16.msra.mxu1 %v938_v46 }
  0x9c   : > { %620 = vmatprep.subr.bf16.mxu0 %v952_v1  ;;  %887 = vmatprep.subr.bf16.mxu1 %v952_v1 }
  0x9f   : > { %621 = vmatpush1.bf16.msra.mxu0 %v939_v47  ;;  %896 = vmatpush1.bf16.msra.mxu1 %v939_v47 }
  0xa0   : > { %622 = vmatprep.subr.bf16.mxu0 %v952_v1  ;;  %888 = vmatprep.subr.bf16.mxu1 %v952_v1 }
  0xa3   : > { %623 = vmatpush1.bf16.msra.mxu0 %v940_v48  ;;  %897 = vmatpush1.bf16.msra.mxu1 %v940_v48 }
  0xa4   : > { %624 = vmatprep.subr.bf16.mxu0 %v952_v1  ;;  %889 = vmatprep.subr.bf16.mxu1 %v952_v1 }
  0xa7   : > { %625 = vmatpush1.bf16.msra.mxu0 %v941_v49  ;;  %898 = vmatpush1.bf16.msra.mxu1 %v941_v49 }
  0xa8   : > { %626 = vmatprep.subr.bf16.mxu0 %v952_v1  ;;  %890 = vmatprep.subr.bf16.mxu1 %v952_v1 }
  0xab   : > { %627 = vmatpush1.bf16.msra.mxu0 %v942_v50  ;;  %899 = vmatpush1.bf16.msra.mxu1 %v942_v50 }
  0xac   : > { %642 = vmatprep.subr.bf16.mxu0 %v952_v1  ;;  %891 = vmatprep.subr.bf16.mxu1 %v952_v1 }
  0xaf   : > { %643 = vmatpush2.bf16.msra.mxu0 %v943_v51  ;;  %900 = vmatpush2.bf16.msra.mxu1 %v943_v51 }
  0xb2   : > { %874 = vmatmul.mubr.msk.bf16.vlgmr.msra.gmra.mxu0 %vm1082_vm5, %v1078_v35  ;;  %878 = vmatmul.mubr.msk.bf16.vlgmr.msra.gmra.mxu1 %vm1106_vm6, %v805_v45 }
 0x14e   : > { %v390_v52 = vpop.f32.mrf.mxu0  ;;  %v512_v53 = vpop.f32.mrf.mxu1 }
 0x14f   : > { %v530_v8 = vrot.slane %v512_v53, 1 }
 0x150   : > { %v392_v54 = vpop.f32.mrf.mxu0  ;;  %v514_v55 = vpop.f32.mrf.mxu1 }
 0x152   : > { %v393_v56 = vpop.f32.mrf.mxu0  ;;  %v515_v57 = vpop.f32.mrf.mxu1 }
 0x153   : > { %v531_v4 = vrot.slane %v515_v57, 1 }
 0x154   : > { %v395_v58 = vpop.f32.mrf.mxu0  ;;  %v517_v59 = vpop.f32.mrf.mxu1 }
 0x155   : > { %v532_v11 = vsel %vm529_vm7, %v530_v8, %v531_v4 }
 0x156   : > { %v398_v60 = vpop.f32.mrf.mxu0  ;;  %v520_v61 = vpop.f32.mrf.mxu1  ;;  %v537_v18 = vadd.f32 %v532_v11, %v390_v52 }
 0x157   : > { %v533_v5 = vrot.slane %v520_v61, 1 }
 0x158   : > { %v399_v62 = vpop.f32.mrf.mxu0  ;;  %v522_v63 = vpop.f32.mrf.mxu1 }
 0x159   : > { %v534_v12 = vsel %vm529_vm7, %v531_v4, %v533_v5 }
 0x15a   : > { %v400_v0 = vpop.f32.mrf.mxu0  ;;  %v523_v1 = vpop.f32.mrf.mxu1  ;;  %v538_v19 = vadd.f32 %v534_v12, %v393_v56 }
 0x15c   : > { %v401_v2 = vpop.f32.mrf.mxu0  ;;  %v524_v3 = vpop.f32.mrf.mxu1 }
 0x172   : > { %v646_v6 = vpop.f32.mrf.mxu0  ;;  %v654_v7 = vpop.f32.mrf.mxu1 }
 0x173   : > { %v664_v15 = vrot.slane %v646_v6, 2  ;;  %v667_v16 = vrot.slane %v654_v7, 2 }
 0x174   : > { %v648_v9 = vpop.f32.mrf.mxu0  ;;  %v656_v10 = vpop.f32.mrf.mxu1 }
 0x176   : > { %v649_v13 = vpop.f32.mrf.mxu0  ;;  %v657_v14 = vpop.f32.mrf.mxu1 }
 0x177   : > { %v665_v17 = vrot.slane %v649_v13, 2 }
 0x178   : > { %v651_v20 = vpop.f32.mrf.mxu0  ;;  %v658_v21 = vpop.f32.mrf.mxu1 }
 0x179   : > { %v666_v22 = vsel %vm663_vm8, %v664_v15, %v665_v17  ;;  %v668_v23 = vsel %vm663_vm8, %v665_v17, %v667_v16 }
 0x17a   : > { %v671_v24 = vadd.f32 %v666_v22, %v537_v18  ;;  %v672_v25 = vadd.f32 %v668_v23, %v538_v19 }
 0x17c   : > { %v673_v26 = vadd.f32 %v672_v25, %v671_v24  ;;  %v680_v27 = vmul.f32 %v671_v24, %v671_v24  ;;  %v681_v28 = vmul.f32 %v672_v25, %v672_v25  ;;  %691 = vst [vmem:[%s231_s6] sm:$0xff] %v671_v24  ;;  %692 = vst [vmem:[%s231_s6 + $0x8] sm:$0xff] %v672_v25 }
 0x17e   : > { %v674_v29 = vrot.slane %v673_v26, 4  ;;  %v682_v30 = vadd.f32 %v681_v28, %v680_v27 }
 0x180   : > { %v675_v31 = vadd.f32 %v674_v29, %v673_v26  ;;  %v683_v32 = vrot.slane %v682_v30, 4 }
 0x182   : > { %v676_v33 = vrot.slane %v675_v31, 2  ;;  %v684_v34 = vadd.f32 %v683_v32, %v682_v30 }
 0x184   : > { %v677_v35 = vadd.f32 %v676_v33, %v675_v31  ;;  %v685_v36 = vrot.slane %v684_v34, 2 }
 0x186   : > { %v678_v37 = vrot.slane %v677_v35, 1  ;;  %v686_v38 = vadd.f32 %v685_v36, %v684_v34 }
 0x188   : > { %v687_v39 = vrot.slane %v686_v38, 1  ;;  %v679_v40 = vadd.f32 %v678_v37, %v677_v35 }
 0x18a   : > { %v688_v41 = vadd.f32 %v687_v39, %v686_v38 }
 0x18c   : > { %v689_v42 = vsel %vm256_vm1, %v679_v40, %v688_v41 }
 0x18d   : > { %690 = vst [vmem:[%s235_s9] sm:$0x3] %v689_v42 }
 0x18e PF: > { %s16_s18 = sadd.s32 1, %s950_s18  }
 0x18f   : > { %p13_p4 = scmp.ge.s32.totalorder %s16_s18, 4  }
 0x191   :  { %15 = sbr.rel (!%p13_p4) target bundleno = 1 (0x1), region = 80 }

// kernel: tile.23
= control target key start
LH: loop header
LB: loop body
LE: loop exit
PB: predicated region body
PF: predicated region fallthrough
CT: control target
= control target key end

     0   :  { %s28_s0 = inlined_call_operand.vmem [shape: f32[8], index: 0, kind: input, shape index: {}]   ;;  %s29_s1 = inlined_call_operand.vmem [shape: f32[16,8], index: 1, kind: output, shape index: {}]  }
   0x1   :  { %v4_v0 = vld [vmem:[%s28_s0] ss:$0 sm:$0xff] }
   0x2   :  { %5 = vst [vmem:[%s29_s1] sm:$0xff] %v4_v0  ;;  %8 = vst [vmem:[%s29_s1 + $0x8] sm:$0xff] %v4_v0 }

// kernel: tile.24
= control target key start
LH: loop header
LB: loop body
LE: loop exit
PB: predicated region body
PF: predicated region fallthrough
CT: control target
= control target key end

     0   :  { %s133_s10 = smov 120   ;;  %s134_s11 = smov 104   ;;  %vm3_vm0 = vcmask 64512   ;;  %vm9_vm1 = vcmask 1048512   ;;  %vm15_vm2 = vcmask 982912   ;;  %vm21_vm3 = vcmask 917312   ;;  %s209_s0 = inlined_call_operand.vmem [shape: f32[16,8], index: 0, kind: input, shape index: {}]   ;;  %s210_s1 = inlined_call_operand.vmem [shape: f32[1,128], index: 1, kind: output, shape index: {}]  }
   0x1   :  { %v103_v0 = vld [vmem:[%s209_s0 + $0xf] sm:$0x1]   ;;  %v105_v1 = vld [vmem:[%s209_s0 + $0xd] sm:$0x1]   ;;  %v104_v2 = vld [vmem:[%s209_s0 + $0xe] sm:$0x1]  }
   0x2   :  { %7 = vrot.lane.b32.xlu0 %v103_v0, %s133_s10  ;;  %19 = vrot.lane.b32.xlu1 %v105_v1, %s134_s11  ;;  %v106_v3 = vld [vmem:[%s209_s0 + $0xc] sm:$0x1]   ;;  %s135_s16 = smov 112   ;;  %s136_s17 = smov 96   ;;  %v107_v4 = vld [vmem:[%s209_s0 + $0xb] sm:$0x1]  }
   0x3   :  { %v108_v5 = vld [vmem:[%s209_s0 + $0xa] sm:$0x1]   ;;  %v2_v6 = vld [vmem:[%s209_s0] sm:$0x1]   ;;  %s137_s24 = smov 88   ;;  %s138_s25 = smov 80  }
   0x4   :  { %4 = vst.msk [vmem:[#allocation0] sm:$0x1] %vm3_vm0, %v2_v6   ;;  %v109_v7 = vld [vmem:[%s209_s0 + $0x9] sm:$0x1]   ;;  %v110_v8 = vld [vmem:[%s209_s0 + $0x8] sm:$0x1]  }
   0x5   :  { %s139_s30 = smov 72   ;;  %s140_s2 = smov 64   ;;  %v111_v9 = vld [vmem:[%s209_s0 + $0x7] sm:$0x1]   ;;  %v112_v10 = vld [vmem:[%s209_s0 + $0x6] sm:$0x1]  }
   0x6   :  { %13 = vrot.lane.b32.xlu0 %v104_v2, %s135_s16  ;;  %25 = vrot.lane.b32.xlu1 %v106_v3, %s136_s17  ;;  %s141_s7 = smov 56   ;;  %s142_s8 = smov 48   ;;  %v113_v11 = vld [vmem:[%s209_s0 + $0x5] sm:$0x1]   ;;  %v114_v12 = vld [vmem:[%s209_s0 + $0x4] sm:$0x1]  }
   0x7   :  { %s143_s13 = smov 40   ;;  %s144_s14 = smov 32   ;;  %v115_v13 = vld [vmem:[%s209_s0 + $0x3] sm:$0x1]   ;;  %v116_v14 = vld [vmem:[%s209_s0 + $0x2] sm:$0x1]  }
   0x8   :  { %s145_s19 = smov 24   ;;  %s146_s20 = smov 16   ;;  %v117_v15 = vld [vmem:[%s209_s0 + $0x1] sm:$0x1]   ;;  %vm27_vm4 = vcmask 851712   ;;  %vm33_vm5 = vcmask 786112  }
   0x9   :  { %s147_s0 = smov 8   ;;  %vm39_vm6 = vcmask 720512   ;;  %vm45_vm7 = vcmask 654912   ;;  %vm51_vm8 = vcmask 589312   ;;  %vm57_vm9 = vcmask 523712  }
   0xa   :  { %31 = vrot.lane.b32.xlu0 %v107_v4, %s137_s24  ;;  %37 = vrot.lane.b32.xlu1 %v108_v5, %s138_s25  ;;  %vm63_vm10 = vcmask 458112   ;;  %vm69_vm11 = vcmask 392512   ;;  %vm75_vm12 = vcmask 326912   ;;  %vm81_vm13 = vcmask 261312  }
   0xb   :  { %vm87_vm14 = vcmask 195712   ;;  %vm93_vm15 = vcmask 130112  }
   0xe   :  { %43 = vrot.lane.b32.xlu0 %v109_v7, %s139_s30  ;;  %49 = vrot.lane.b32.xlu1 %v110_v8, %s140_s2 }
  0x12   :  { %55 = vrot.lane.b32.xlu0 %v111_v9, %s141_s7  ;;  %61 = vrot.lane.b32.xlu1 %v112_v10, %s142_s8 }
  0x16   :  { %67 = vrot.lane.b32.xlu0 %v113_v11, %s143_s13  ;;  %73 = vrot.lane.b32.xlu1 %v114_v12, %s144_s14 }
  0x1a   :  { %79 = vrot.lane.b32.xlu0 %v115_v13, %s145_s19  ;;  %85 = vrot.lane.b32.xlu1 %v116_v14, %s146_s20 }
  0x1e   :  { %91 = vrot.lane.b32.xlu0 %v117_v15, %s147_s0 }
  0x74   :  { %v8_v16 = vpop.permute.xlu0 %7   ;;  %v20_v17 = vpop.permute.xlu1 %19  }
  0x75   :  { %10 = vst.msk [vmem:[#allocation0] sm:$0x1] %vm9_vm1, %v8_v16  }
  0x78   :  { %v14_v18 = vpop.permute.xlu0 %13   ;;  %v26_v19 = vpop.permute.xlu1 %25  }
  0x79   :  { %16 = vst.msk [vmem:[#allocation0] sm:$0x1] %vm15_vm2, %v14_v18  }
  0x7a   :  { %22 = vst.msk [vmem:[#allocation0] sm:$0x1] %vm21_vm3, %v20_v17  }
  0x7b   :  { %28 = vst.msk [vmem:[#allocation0] sm:$0x1] %vm27_vm4, %v26_v19  }
  0x7c   :  { %v32_v20 = vpop.permute.xlu0 %31   ;;  %v38_v21 = vpop.permute.xlu1 %37  }
  0x7d   :  { %34 = vst.msk [vmem:[#allocation0] sm:$0x1] %vm33_vm5, %v32_v20  }
  0x7e   :  { %40 = vst.msk [vmem:[#allocation0] sm:$0x1] %vm39_vm6, %v38_v21  }
  0x80   :  { %v44_v22 = vpop.permute.xlu0 %43   ;;  %v50_v23 = vpop.permute.xlu1 %49  }
  0x81   :  { %46 = vst.msk [vmem:[#allocation0] sm:$0x1] %vm45_vm7, %v44_v22  }
  0x82   :  { %52 = vst.msk [vmem:[#allocation0] sm:$0x1] %vm51_vm8, %v50_v23  }
  0x84   :  { %v56_v24 = vpop.permute.xlu0 %55   ;;  %v62_v25 = vpop.permute.xlu1 %61  }
  0x85   :  { %58 = vst.msk [vmem:[#allocation0] sm:$0x1] %vm57_vm9, %v56_v24  }
  0x86   :  { %64 = vst.msk [vmem:[#allocation0] sm:$0x1] %vm63_vm10, %v62_v25  }
  0x88   :  { %v68_v26 = vpop.permute.xlu0 %67   ;;  %v74_v27 = vpop.permute.xlu1 %73  }
  0x89   :  { %70 = vst.msk [vmem:[#allocation0] sm:$0x1] %vm69_vm11, %v68_v26  }
  0x8a   :  { %76 = vst.msk [vmem:[#allocation0] sm:$0x1] %vm75_vm12, %v74_v27  }
  0x8c   :  { %v80_v28 = vpop.permute.xlu0 %79   ;;  %v86_v29 = vpop.permute.xlu1 %85  }
  0x8d   :  { %82 = vst.msk [vmem:[#allocation0] sm:$0x1] %vm81_vm13, %v80_v28  }
  0x8e   :  { %88 = vst.msk [vmem:[#allocation0] sm:$0x1] %vm87_vm14, %v86_v29  }
  0x90   :  { %v92_v30 = vpop.permute.xlu0 %91  }
  0x91   :  { %94 = vst.msk [vmem:[#allocation0] sm:$0x1] %vm93_vm15, %v92_v30  }
  0x98   :  { %v99_v31 = vld [vmem:[#allocation0] sm:$0x1] }
  0x99   :  { %102 = vst [vmem:[%s210_s1] sm:$0x1] %v99_v31 }

// kernel: residual_block_forward.4
= control target key start
LH: loop header
LB: loop body
LE: loop exit
PB: predicated region body
PF: predicated region fallthrough
CT: control target
= control target key end

     0   :  { %s1029_s18 = smov 0   ;;  %s1219_s0 = inlined_call_operand.vmem [shape: f32[2,16,128], index: 0, kind: input, shape index: {}]   ;;  %s1220_s1 = inlined_call_operand.vmem [shape: bf16[3,144,128], index: 1, kind: input, shape index: {}]   ;;  %s1221_s2 = inlined_call_operand.vmem [shape: f32[1,128], index: 2, kind: input, shape index: {}]   ;;  %s1222_s3 = inlined_call_operand.vmem [shape: f32[1,128], index: 3, kind: input, shape index: {}]   ;;  %s1223_s4 = inlined_call_operand.vmem [shape: f32[2,16,128], index: 4, kind: output, shape index: {0}]   ;;  %s1224_s5 = inlined_call_operand.vmem [shape: f32[2,2,128], index: 5, kind: output, shape index: {1}]  }
   0x1 LB: > { %s811_s19 = sadd.s32 4294967295, %s994_s18   ;;  %p815_p0 = scmp.ge.s32.totalorder %s994_s18, 1  ;;  %s994_s18 = sphi %s1029_s18, %s16_s18  }
   0x2   : > { %p190_p1 = scmp.lt.s32.totalorder %s994_s18, 3 }
   0x4   : > { %p191_p2 = pnand %p815_p0, %p190_p1 }
   0x5   : > { %p222_p3 = scmp.lt.s32.totalorder (!%p191_p2), %s811_s19, 1  ;;  %s997_s17 = smov (!%p191_p2), 8  }
   0x6   : > { %194 = sbr.rel (%p191_p2) target bundleno = 436 (0x1b4), region = 36 }
   0xb   : > { %v953_v0 = vld [vmem:[%s1220_s1 + $0x38] sm:$0xff]   ;;  %s1230_s19 = smov (!%p222_p3, %s811_s19), 1  ;;  %v821_v1 = vld [vmem:[%s1221_s2] ss:$0 sm:$0xff]  ;;  %v996_v2 = vmov 0   ;;  %v955_v4 = vld [vmem:[%s1220_s1 + $0x30] sm:$0xff]  }
   0xc   : > { %388 = vmatprep.subr.bf16.mxu0 %v996_v2  ;;  %510 = vmatprep.subr.bf16.mxu1 %v996_v2  ;;  %v954_v3 = vld [vmem:[%s1220_s1 + $0x80] sm:$0xff]   ;;  %s917_s28 = sshll.u32 %s1230_s19, 4  ;;  %v956_v5 = vld [vmem:[%s1220_s1 + $0x78] sm:$0xff]   ;;  %v957_v11 = vld [vmem:[%s1220_s1 + $0x28] sm:$0xff]   ;;  %vm279_vm0 = vcmask 64512   ;;  %vm288_vm1 = vcmask 1040384  }
   0xd   : > { %389 = vmatpush1.bf16.msra.mxu0 %v953_v0  ;;  %511 = vmatpush1.bf16.msra.mxu1 %v954_v3  ;;  %s226_s6 = scalar_lea.vmem %s1219_s0, %s917_s28  ;;  %v822_v8 = vld [vmem:[%s1222_s3] ss:$0 sm:$0xff]  ;;  %v958_v12 = vld [vmem:[%s1220_s1 + $0x70] sm:$0xff]   ;;  %v960_v18 = vld [vmem:[%s1220_s1 + $0x68] sm:$0xff]   ;;  %vm381_vm3 = vcmask 130048   ;;  %vm998_vm4 = vmmov 1   ;;  %s231_s16 = scalar_lea.vmem %s1223_s4, %s917_s28 }
   0xe   : > { %390 = vmatprep.subr.bf16.mxu0 %v996_v2  ;;  %512 = vmatprep.subr.bf16.mxu1 %v996_v2  ;;  %v237_v6 = vld [vmem:[%s226_s6] sm:$0xff]  ;;  %v238_v7 = vld [vmem:[%s226_s6 + $0x8] sm:$0xff]  ;;  %v961_v19 = vld [vmem:[%s1220_s1 + $0x18] sm:$0xff]   ;;  %vm561_vm7 = vcmask 1046528   ;;  %vm695_vm8 = vcmask 1045504   ;;  %s820_s28 = sshll.u32 %s1230_s19, 1 }
   0xf   : > { %v246_v9 = vmul.f32 %v821_v1, %v237_v6  ;;  %v247_v10 = vmul.f32 %v821_v1, %v238_v7  ;;  %v959_v15 = vld [vmem:[%s1220_s1 + $0x20] sm:$0xff]   ;;  %v963_v21 = vld [vmem:[%s1220_s1 + $0x10] sm:$0xff]   ;;  %v964_v22 = vld [vmem:[%s1220_s1 + $0x58] sm:$0xff]   ;;  %s235_s21 = scalar_lea.vmem %s1224_s5, %s820_s28 }
  0x10   : > { %v962_v20 = vld [vmem:[%s1220_s1 + $0x60] sm:$0xff]   ;;  %v965_v23 = vld [vmem:[%s1220_s1 + $0x8] sm:$0xff]   ;;  %v966_v24 = vld [vmem:[%s1220_s1 + $0x50] sm:$0xff]  }
  0x11   : > { %391 = vmatpush1.bf16.msra.mxu0 %v955_v4  ;;  %513 = vmatpush1.bf16.msra.mxu1 %v956_v5  ;;  %v255_v13 = vadd.f32 %v822_v8, %v246_v9  ;;  %v256_v14 = vadd.f32 %v822_v8, %v247_v10  ;;  %v967_v29 = vld [vmem:[%s1220_s1] sm:$0xff]   ;;  %v968_v30 = vld [vmem:[%s1220_s1 + $0x48] sm:$0xff]   ;;  %vm835_vm2 = vmneg %vm288_vm1 }
  0x12   : > { %392 = vmatprep.subr.bf16.mxu0 %v996_v2  ;;  %514 = vmatprep.subr.bf16.mxu1 %v996_v2  ;;  %v969_v31 = vld [vmem:[%s1220_s1 + $0x40] sm:$0xff]   ;;  %v970_v32 = vld [vmem:[%s1220_s1 + $0x88] sm:$0xff]   ;;  %vm1132_vm5 = vmpackc.low %vm998_vm4, %vm835_vm2 }
  0x13   : > { %v823_v16 = vmul.f32 -1.442695, %v255_v13  ;;  %v824_v17 = vmul.f32 -1.442695, %v256_v14  ;;  %v971_v56 = vld [vmem:[%s1220_s1 + $0xc8] sm:$0xff]   ;;  %v972_v58 = vld [vmem:[%s1220_s1 + $0xc0] sm:$0xff]   ;;  %vm1156_vm6 = vmpackc.low %vm288_vm1, %vm288_vm1 }
  0x14   : > { %v973_v60 = vld [vmem:[%s1220_s1 + $0xb8] sm:$0xff]   ;;  %v974_v62 = vld [vmem:[%s1220_s1 + $0xb0] sm:$0xff]   ;;  %v975_v63 = vld [vmem:[%s1220_s1 + $0xa8] sm:$0xff]  }
  0x15   : > { %393 = vmatpush1.bf16.msra.mxu0 %v957_v11  ;;  %515 = vmatpush1.bf16.msra.mxu1 %v958_v12  ;;  %980 = vpow2.f32 %v823_v16  ;;  %v976_v0 = vld [vmem:[%s1220_s1 + $0xa0] sm:$0xff]   ;;  %v977_v1 = vld [vmem:[%s1220_s1 + $0x98] sm:$0xff]   ;;  %v978_v3 = vld [vmem:[%s1220_s1 + $0x90] sm:$0xff]  }
  0x16   : > { %394 = vmatprep.subr.bf16.mxu0 %v996_v2  ;;  %516 = vmatprep.subr.bf16.mxu1 %v996_v2  ;;  %982 = vpow2.f32 %v824_v17  ;;  %v979_v4 = vld [vmem:[%s1220_s1 + $0xd0] sm:$0xff]  }
  0x19   : > { %395 = vmatpush1.bf16.msra.mxu0 %v959_v15  ;;  %517 = vmatpush1.bf16.msra.mxu1 %v960_v18 }
  0x1a   : > { %396 = vmatprep.subr.bf16.mxu0 %v996_v2  ;;  %518 = vmatprep.subr.bf16.mxu1 %v996_v2 }
  0x1d   : > { %397 = vmatpush1.bf16.msra.mxu0 %v961_v19  ;;  %519 = vmatpush1.bf16.msra.mxu1 %v962_v20 }
  0x1e   : > { %398 = vmatprep.subr.bf16.mxu0 %v996_v2  ;;  %520 = vmatprep.subr.bf16.mxu1 %v996_v2 }
  0x21   : > { %399 = vmatpush1.bf16.msra.mxu0 %v963_v21  ;;  %521 = vmatpush1.bf16.msra.mxu1 %v964_v22 }
  0x22   : > { %400 = vmatprep.subr.bf16.mxu0 %v996_v2  ;;  %522 = vmatprep.subr.bf16.mxu1 %v996_v2  ;;  %v981_v25 = vpop.eup %980 }
  0x23   : > { %v983_v26 = vpop.eup %982  ;;  %v263_v27 = vadd.f32 1.0, %v981_v25 }
  0x24   : > { %v264_v28 = vadd.f32 1.0, %v983_v26 }
  0x25   : > { %401 = vmatpush1.bf16.msra.mxu0 %v965_v23  ;;  %523 = vmatpush1.bf16.msra.mxu1 %v966_v24  ;;  %984 = vrcp.f32 %v263_v27 }
  0x26   : > { %402 = vmatprep.subr.bf16.mxu0 %v996_v2  ;;  %524 = vmatprep.subr.bf16.mxu1 %v996_v2  ;;  %986 = vrcp.f32 %v264_v28 }
  0x29   : > { %403 = vmatpush1.bf16.msra.mxu0 %v967_v29  ;;  %525 = vmatpush1.bf16.msra.mxu1 %v968_v30 }
  0x2a   : > { %418 = vmatprep.subr.bf16.mxu0 %v996_v2  ;;  %540 = vmatprep.subr.bf16.mxu1 %v996_v2 }
  0x2d   : > { %419 = vmatpush2.bf16.msra.mxu0 %v969_v31  ;;  %541 = vmatpush2.bf16.msra.mxu1 %v970_v32 }
  0x2e   : > { %644 = vmatprep.subr.bf16.mxu0 %v996_v2  ;;  %919 = vmatprep.subr.bf16.mxu1 %v996_v2 }
  0x32   : > { %v985_v33 = vpop.eup %984 }
  0x33   : > { %v987_v34 = vpop.eup %986  ;;  %v269_v35 = vmul.f32 %v985_v33, %v255_v13 }
  0x34   : > { %v270_v36 = vmul.f32 %v987_v34, %v256_v14 }
  0x36   : > { %v948_v37 = vpack.i.bf16 %v270_v36, %v269_v35 }
  0x38   : > { %949 = vrot.lane.b32.xlu0 %v948_v37, %s997_s17 }
  0xaa   : > { %v950_v38 = vpop.permute.xlu0 %949 }
  0xab   : > { %v952_v39 = vunpack.i.h.bf16 %v950_v38  ;;  %v951_v40 = vunpack.i.l.bf16 %v950_v38 }
  0xad   : > { %v281_v41 = vsel %vm279_vm0, 0.0, %v952_v39  ;;  %v283_v42 = vsel %vm279_vm0, %v952_v39, 0.0  ;;  %v280_v43 = vsel %vm279_vm0, 0.0, %v951_v40  ;;  %v282_v44 = vsel %vm279_vm0, %v951_v40, 0.0 }
  0xae   : > { %v291_v45 = vrot.slane %v281_v41, 7  ;;  %v293_v46 = vrot.slane %v283_v42, 7  ;;  %v289_v47 = vrot.slane %v280_v43, 7  ;;  %v290_v48 = vrot.slane %v282_v44, 7 }
  0xb0   : > { %v292_v49 = vsel %vm288_vm1, %v289_v47, %v291_v45  ;;  %v302_v50 = vsel %vm288_vm1, 0.0, %v290_v48  ;;  %v294_v52 = vsel %vm288_vm1, %v290_v48, %v293_v46  ;;  %v304_v53 = vsel %vm288_vm1, %v293_v46, 0.0 }
  0xb1   : > { %v1128_v51 = vpack.c.bf16 %v292_v49, %v289_v47  ;;  %v306_v54 = vpack.c.bf16 %v294_v52, %v302_v50  ;;  %v308_v57 = vpack.c.bf16 %v304_v53, %v304_v53  ;;  %v841_v61 = vpack.c.bf16 %v291_v45, %v291_v45 }
  0xb3   : > { %834 = vmatprep.mubr.msk.bf16.mxu0 %vm381_vm3, %v306_v54  ;;  %870 = vmatprep.mubr.msk.bf16.mxu1 %vm381_vm3, %v306_v54 }
  0xb4   : > { %838 = vmatmul.mubr.msk.bf16.vlgmr.msra.gmra.mxu0 %vm1132_vm5, %v1128_v51  ;;  %874 = vmatmul.mubr.msk.bf16.vlgmr.msra.gmra.mxu1 %vm1132_vm5, %v1128_v51 }
  0xb5   : > { %645 = vmatpush1.bf16.msra.mxu0 %v971_v56  ;;  %928 = vmatpush1.bf16.msra.mxu1 %v971_v56 }
  0xb6   : > { %839 = vmatprep.mubr.msk.bf16.mxu0 %vm381_vm3, %v308_v57  ;;  %875 = vmatprep.mubr.msk.bf16.mxu1 %vm381_vm3, %v308_v57 }
  0xb7   : > { %646 = vmatprep.subr.bf16.mxu0 %v996_v2  ;;  %920 = vmatprep.subr.bf16.mxu1 %v996_v2 }
  0xb9   : > { %647 = vmatpush1.bf16.msra.mxu0 %v972_v58  ;;  %929 = vmatpush1.bf16.msra.mxu1 %v972_v58 }
  0xba   : > { %648 = vmatprep.subr.bf16.mxu0 %v996_v2  ;;  %921 = vmatprep.subr.bf16.mxu1 %v996_v2 }
  0xbc   : > { %842 = vmatmul.mubr.msk.bf16.gmra.mxu0 %vm1156_vm6, %v841_v61  ;;  %878 = vmatmul.mubr.msk.bf16.gmra.mxu1 %vm1156_vm6, %v841_v61 }
  0xbd   : > { %649 = vmatpush1.bf16.msra.mxu0 %v973_v60  ;;  %930 = vmatpush1.bf16.msra.mxu1 %v973_v60 }
  0xbe   : > { %906 = vmatprep.mubr.msk.bf16.mxu0 %vm381_vm3, %v306_v54  ;;  %911 = vmatprep.mubr.msk.bf16.mxu1 %vm381_vm3, %v308_v57 }
  0xbf   : > { %650 = vmatprep.subr.bf16.mxu0 %v996_v2  ;;  %922 = vmatprep.subr.bf16.mxu1 %v996_v2 }
  0xc1   : > { %651 = vmatpush1.bf16.msra.mxu0 %v974_v62  ;;  %931 = vmatpush1.bf16.msra.mxu1 %v974_v62 }
  0xc2   : > { %652 = vmatprep.subr.bf16.mxu0 %v996_v2  ;;  %923 = vmatprep.subr.bf16.mxu1 %v996_v2 }
  0xc5   : > { %653 = vmatpush1.bf16.msra.mxu0 %v975_v63  ;;  %932 = vmatpush1.bf16.msra.mxu1 %v975_v63 }
  0xc6   : > { %654 = vmatprep.subr.bf16.mxu0 %v996_v2  ;;  %924 = vmatprep.subr.bf16.mxu1 %v996_v2 }
  0xc9   : > { %655 = vmatpush1.bf16.msra.mxu0 %v976_v0  ;;  %933 = vmatpush1.bf16.msra.mxu1 %v976_v0 }
  0xca   : > { %656 = vmatprep.subr.bf16.mxu0 %v996_v2  ;;  %925 = vmatprep.subr.bf16.mxu1 %v996_v2 }
  0xcd   : > { %657 = vmatpush1.bf16.msra.mxu0 %v977_v1  ;;  %934 = vmatpush1.bf16.msra.mxu1 %v977_v1 }
  0xce   : > { %658 = vmatprep.subr.bf16.mxu0 %v996_v2  ;;  %926 = vmatprep.subr.bf16.mxu1 %v996_v2 }
  0xd1   : > { %659 = vmatpush1.bf16.msra.mxu0 %v978_v3  ;;  %935 = vmatpush1.bf16.msra.mxu1 %v978_v3 }
  0xd2   : > { %674 = vmatprep.subr.bf16.mxu0 %v996_v2  ;;  %927 = vmatprep.subr.bf16.mxu1 %v996_v2 }
  0xd5   : > { %675 = vmatpush2.bf16.msra.mxu0 %v979_v4  ;;  %936 = vmatpush2.bf16.msra.mxu1 %v979_v4 }
  0xd8   : > { %910 = vmatmul.mubr.msk.bf16.vlgmr.msra.gmra.mxu0 %vm1132_vm5, %v1128_v51  ;;  %914 = vmatmul.mubr.msk.bf16.vlgmr.msra.gmra.mxu1 %vm1156_vm6, %v841_v61 }
 0x174   : > { %v422_v5 = vpop.f32.mrf.mxu0  ;;  %v544_v6 = vpop.f32.mrf.mxu1 }
 0x175   : > { %v562_v24 = vrot.slane %v544_v6, 1 }
 0x176   : > { %v424_v7 = vpop.f32.mrf.mxu0  ;;  %v546_v8 = vpop.f32.mrf.mxu1 }
 0x178   : > { %v425_v9 = vpop.f32.mrf.mxu0  ;;  %v547_v10 = vpop.f32.mrf.mxu1 }
 0x179   : > { %v563_v20 = vrot.slane %v547_v10, 1 }
 0x17a   : > { %v427_v11 = vpop.f32.mrf.mxu0  ;;  %v549_v12 = vpop.f32.mrf.mxu1 }
 0x17b   : > { %v564_v27 = vsel %vm561_vm7, %v562_v24, %v563_v20 }
 0x17c   : > { %v430_v13 = vpop.f32.mrf.mxu0  ;;  %v552_v14 = vpop.f32.mrf.mxu1  ;;  %v569_v34 = vadd.f32 %v564_v27, %v422_v5 }
 0x17d   : > { %v565_v21 = vrot.slane %v552_v14, 1 }
 0x17e   : > { %v431_v2 = vpop.f32.mrf.mxu0  ;;  %v554_v15 = vpop.f32.mrf.mxu1 }
 0x17f   : > { %v566_v28 = vsel %vm561_vm7, %v563_v20, %v565_v21 }
 0x180   : > { %v432_v16 = vpop.f32.mrf.mxu0  ;;  %v555_v17 = vpop.f32.mrf.mxu1  ;;  %v570_v35 = vadd.f32 %v566_v28, %v425_v9 }
 0x182   : > { %v433_v18 = vpop.f32.mrf.mxu0  ;;  %v556_v19 = vpop.f32.mrf.mxu1 }
 0x198   : > { %v678_v22 = vpop.f32.mrf.mxu0  ;;  %v686_v23 = vpop.f32.mrf.mxu1 }
 0x199   : > { %v696_v31 = vrot.slane %v678_v22, 2  ;;  %v699_v32 = vrot.slane %v686_v23, 2 }
 0x19a   : > { %v680_v25 = vpop.f32.mrf.mxu0  ;;  %v688_v26 = vpop.f32.mrf.mxu1 }
 0x19c   : > { %v681_v29 = vpop.f32.mrf.mxu0  ;;  %v689_v30 = vpop.f32.mrf.mxu1 }
 0x19d   : > { %v697_v33 = vrot.slane %v681_v29, 2 }
 0x19e   : > { %v683_v36 = vpop.f32.mrf.mxu0  ;;  %v690_v37 = vpop.f32.mrf.mxu1 }
 0x19f   : > { %v698_v38 = vsel %vm695_vm8, %v696_v31, %v697_v33  ;;  %v700_v39 = vsel %vm695_vm8, %v697_v33, %v699_v32 }
 0x1a0   : > { %v703_v40 = vadd.f32 %v698_v38, %v569_v34  ;;  %v704_v41 = vadd.f32 %v700_v39, %v570_v35 }
 0x1a2   : > { %v705_v42 = vadd.f32 %v704_v41, %v703_v40  ;;  %v712_v43 = vmul.f32 %v703_v40, %v703_v40  ;;  %v713_v44 = vmul.f32 %v704_v41, %v704_v41  ;;  %723 = vst [vmem:[%s231_s16] sm:$0xff] %v703_v40  ;;  %724 = vst [vmem:[%s231_s16 + $0x8] sm:$0xff] %v704_v41 }
 0x1a4   : > { %v706_v45 = vrot.slane %v705_v42, 4  ;;  %v714_v46 = vadd.f32 %v713_v44, %v712_v43 }
 0x1a6   : > { %v707_v47 = vadd.f32 %v706_v45, %v705_v42  ;;  %v715_v48 = vrot.slane %v714_v46, 4 }
 0x1a8   : > { %v708_v49 = vrot.slane %v707_v47, 2  ;;  %v716_v50 = vadd.f32 %v715_v48, %v714_v46 }
 0x1aa   : > { %v709_v51 = vadd.f32 %v708_v49, %v707_v47  ;;  %v717_v52 = vrot.slane %v716_v50, 2 }
 0x1ac   : > { %v710_v53 = vrot.slane %v709_v51, 1  ;;  %v718_v54 = vadd.f32 %v717_v52, %v716_v50 }
 0x1ae   : > { %v719_v55 = vrot.slane %v718_v54, 1  ;;  %v711_v56 = vadd.f32 %v710_v53, %v709_v51 }
 0x1b0   : > { %v720_v57 = vadd.f32 %v719_v55, %v718_v54 }
 0x1b2   : > { %v721_v58 = vsel %vm288_vm1, %v711_v56, %v720_v57 }
 0x1b3   : > { %722 = vst [vmem:[%s235_s21] sm:$0x3] %v721_v58 }
 0x1b4 PF: > { %s16_s18 = sadd.s32 1, %s994_s18  }
 0x1b5   : > { %p13_p4 = scmp.ge.s32.totalorder %s16_s18, 4  }
 0x1b7   :  { %15 = sbr.rel (!%p13_p4) target bundleno = 1 (0x1), region = 80 }

// kernel: residual_block_forward.5
= control target key start
LH: loop header
LB: loop body
LE: loop exit
PB: predicated region body
PF: predicated region fallthrough
CT: control target
= control target key end

     0   :  { %s370_s15 = smov 0   ;;  %s396_s0 = inlined_call_operand.vmem [shape: f32[2,16,128], index: 0, kind: input, shape index: {}]   ;;  %s397_s1 = inlined_call_operand.vmem [shape: f32[2,16,128], index: 1, kind: input, shape index: {}]   ;;  %s398_s2 = inlined_call_operand.vmem [shape: f32[1,128], index: 2, kind: input, shape index: {}]   ;;  %s399_s3 = inlined_call_operand.vmem [shape: f32[1,128], index: 3, kind: input, shape index: {}]   ;;  %s400_s4 = inlined_call_operand.vmem [shape: f32[2,16,128], index: 4, kind: output, shape index: {}]  }
   0x1 LB: > { %s311_s16 = sadd.s32 4294967295, %s343_s15   ;;  %p315_p0 = scmp.ge.s32.totalorder %s343_s15, 1  ;;  %s343_s15 = sphi %s370_s15, %s14_s15  }
   0x2   : > { %p172_p1 = scmp.lt.s32.totalorder %s343_s15, 3 }
   0x4   : > { %p173_p2 = pnand %p315_p0, %p172_p1 }
   0x5   : > { %p203_p3 = scmp.lt.s32.totalorder (!%p173_p2), %s311_s16, 1 }
   0x6   : > { %176 = sbr.rel (%p173_p2) target bundleno = 22 (0x16), region = 36 }
   0xb   : > { %s402_s16 = smov (!%p203_p3, %s311_s16), 1  ;;  %v322_v0 = vld [vmem:[%s398_s2] ss:$0 sm:$0xff] }
   0xc   : > { %s326_s17 = sshll.u32 %s402_s16, 4  ;;  %v323_v3 = vld [vmem:[%s399_s3] ss:$0 sm:$0xff] }
   0xd   : > { %s207_s22 = scalar_lea.vmem %s396_s0, %s326_s17  ;;  %s212_s25 = scalar_lea.vmem %s397_s1, %s326_s17 }
   0xe   : > { %v218_v1 = vld [vmem:[%s207_s22] sm:$0xff]  ;;  %v219_v2 = vld [vmem:[%s207_s22 + $0x8] sm:$0xff]  ;;  %s217_s30 = scalar_lea.vmem %s400_s4, %s326_s17 }
   0xf   : > { %v227_v4 = vmul.f32 %v322_v0, %v218_v1  ;;  %v228_v5 = vmul.f32 %v322_v0, %v219_v2  ;;  %v238_v6 = vld [vmem:[%s212_s25] sm:$0xff]  ;;  %v239_v7 = vld [vmem:[%s212_s25 + $0x8] sm:$0xff] }
  0x11   : > { %v236_v8 = vadd.f32 %v323_v3, %v227_v4  ;;  %v237_v9 = vadd.f32 %v323_v3, %v228_v5 }
  0x13   : > { %v240_v10 = vadd.f32 %v238_v6, %v236_v8  ;;  %v241_v11 = vadd.f32 %v239_v7, %v237_v9 }
  0x15   : > { %242 = vst [vmem:[%s217_s30] sm:$0xff] %v240_v10  ;;  %243 = vst [vmem:[%s217_s30 + $0x8] sm:$0xff] %v241_v11 }
  0x16 PF: > { %s14_s15 = sadd.s32 1, %s343_s15  }
  0x17   : > { %p11_p4 = scmp.ge.s32.totalorder %s14_s15, 4  }
  0x19   :  { %13 = sbr.rel (!%p11_p4) target bundleno = 1 (0x1), region = 69 }

</bundles_post_ra>
